<compile_context>
chip_gen: v7x
topology: tpu7x:2x2x1
jax: 0.10.0
libtpu: 0.0.40
codegen_flags: <defaults>
</compile_context>

<pallas_src>
import jax
import jax.numpy as jnp
from jax.experimental import pallas as pl
from jax.experimental.pallas import tpu as pltpu


def _round_up(x, m):
    return (x + m - 1) // m * m


def _dqn_kernel(x_ref, w1_ref, w2_ref, wq_ref, b_ref, out_ref):
    mm_dtype = w1_ref.dtype          # f32 or bf16 matmul operands
    h_pad = w1_ref.shape[1]
    q_pad = wq_ref.shape[1]

    x = x_ref[...].astype(mm_dtype)

    # fc1 + ReLU  (f32 accumulation, f32 elementwise)
    h = jnp.dot(x, w1_ref[...], preferred_element_type=jnp.float32)
    h = jnp.maximum(h + b_ref[0:1, :h_pad], 0.0)

    # fc2 + ReLU
    h = jnp.dot(h.astype(mm_dtype), w2_ref[...], preferred_element_type=jnp.float32)
    h = jnp.maximum(h + b_ref[1:2, :h_pad], 0.0)

    # Fused dueling heads: the V + (A - mean(A)) combine is already folded
    # into wq/bq at prep time, so this dot is the last op (no epilogue).
    q = jnp.dot(h.astype(mm_dtype), wq_ref[...], preferred_element_type=jnp.float32)
    out_ref[...] = (q + b_ref[2:3, :q_pad]).astype(out_ref.dtype)


def prepare_params(params, *, matmul_dtype=jnp.float32, out_dtype=jnp.float32):
    """One-time prep: fold the dueling combine into the head weights and
    zero-pad hidden / head widths to the 128-lane granule."""
    state_size, hidden = params["fc1_w"].shape
    num_road = params["road_adv_w"].shape[1]
    num_upg = params["upgrade_adv_w"].shape[1]

    h_pad = _round_up(hidden, 128)
    q_pad = _round_up(num_road + num_upg, 128)

    def pad2(a, rows, cols):
        return jnp.pad(a, ((0, rows - a.shape[0]), (0, cols - a.shape[1])))

    # Concatenated raw heads: [road_adv | road_val | upgrade_adv | upgrade_val]
    head_w = jnp.concatenate([params["road_adv_w"], params["road_val_w"],
                              params["upgrade_adv_w"], params["upgrade_val_w"]],
                             axis=1)
    head_b = jnp.concatenate([params["road_adv_b"], params["road_val_b"],
                              params["upgrade_adv_b"], params["upgrade_val_b"]],
                             axis=1)

    # Dueling combine as a constant linear map M : [NR+1+NU+1] -> [NR+NU]
    #   q_road[j] = road_adv[j] - mean(road_adv) + road_val
    #   q_upg[j]  = upg_adv[j]  - mean(upg_adv)  + upg_val
    w = num_road + 1 + num_upg + 1
    m = jnp.zeros((w, num_road + num_upg), jnp.float32)
    m = m.at[:num_road, :num_road].set(jnp.eye(num_road) - 1.0 / num_road)
    m = m.at[num_road, :num_road].set(1.0)
    m = m.at[num_road + 1:num_road + 1 + num_upg, num_road:].set(
        jnp.eye(num_upg) - 1.0 / num_upg)
    m = m.at[num_road + 1 + num_upg, num_road:].set(1.0)

    wq = head_w @ m                    # [hidden, NR+NU]
    bq = head_b @ m                    # [1, NR+NU]

    # One resident f32 bias array: row 0 = fc1, row 1 = fc2, row 2 = fused head.
    wb = max(h_pad, q_pad)
    bias = jnp.zeros((3, wb), jnp.float32)
    bias = bias.at[0, :hidden].set(params["fc1_b"].reshape(-1))
    bias = bias.at[1, :hidden].set(params["fc2_b"].reshape(-1))
    bias = bias.at[2, :num_road + num_upg].set(bq.reshape(-1))

    return {
        # w1 rows stay at the natural state_size (input is not lane-padded).
        "w1": pad2(params["fc1_w"], state_size, h_pad).astype(matmul_dtype),
        "w2": pad2(params["fc2_w"], h_pad, h_pad).astype(matmul_dtype),
        "wq": pad2(wq, h_pad, q_pad).astype(matmul_dtype),
        "bias": bias,                                       # f32
        "state_size": state_size,
        "h_pad": h_pad,
        "q_pad": q_pad,
        "num_road": num_road,
        "num_upg": num_upg,
        "out_dtype": out_dtype,
    }


def dqn_forward(state, prep, *, max_tile_b=1024):
    """state: [B, state_size] (f32 or bf16). prep: output of prepare_params."""
    batch, state_size = state.shape
    assert state_size == prep["state_size"]
    num_road, num_upg = prep["num_road"], prep["num_upg"]
    q_pad = prep["q_pad"]

    # Batch tiling (no padding, no extra HBM round trip):
    #  * split into >= 2 balanced tiles when the batch allows, so the
    #    ("parallel",) axis can feed both TensorCores on v7x;
    #  * 16-row granule keeps sublane alignment for f32 and bf16 I/O;
    #  * the ragged trailing tile uses Pallas' masked partial-block handling
    #    (OOB input rows produce garbage rows whose stores are masked; rows
    #    are independent so they cannot contaminate valid rows).
    max_tile_b = max(16, _round_up(max_tile_b, 16))
    tile_b = min(max_tile_b, _round_up(pl.cdiv(_round_up(batch, 16), 2), 16))
    if tile_b >= batch:
        tile_b = batch            # single full-extent block (legal for any B)
    grid = (pl.cdiv(batch, tile_b),)

    w1, w2, wq, bias = prep["w1"], prep["w2"], prep["wq"], prep["bias"]

    def resident(a):
        # Full-array block + constant index_map -> stays VMEM-resident across
        # grid steps (only the state tile and output tile stream per step).
        return pl.BlockSpec(a.shape, lambda i: (0, 0))

    out = pl.pallas_call(
        _dqn_kernel,
        out_shape=jax.ShapeDtypeStruct((batch, q_pad), prep["out_dtype"]),
        grid=grid,
        in_specs=[
            pl.BlockSpec((tile_b, state_size), lambda i: (i, 0)),  # state tile
            resident(w1), resident(w2), resident(wq), resident(bias),
        ],
        out_specs=pl.BlockSpec((tile_b, q_pad), lambda i: (i, 0)),
        compiler_params=pltpu.CompilerParams(
            dimension_semantics=("parallel",)),
    )(state, w1, w2, wq, bias)

    q_road = out[:, :num_road]
    q_upgrade = out[:, num_road:num_road + num_upg]
    return q_road, q_upgrade


def init_params(key, state_size, num_road, num_upg, hidden):
    """PyTorch-default-like init (uniform(-1/sqrt(fan_in), 1/sqrt(fan_in)));
    weights stored as [in, out]."""
    def linear(k, fan_in, fan_out):
        kw, kb = jax.random.split(k)
        bound = 1.0 / jnp.sqrt(jnp.float32(fan_in))
        w = jax.random.uniform(kw, (fan_in, fan_out), jnp.float32, -bound, bound)
        b = jax.random.uniform(kb, (1, fan_out), jnp.float32, -bound, bound)
        return w, b

    keys = jax.random.split(key, 6)
    p = {}
    p["fc1_w"], p["fc1_b"] = linear(keys[0], state_size, hidden)
    p["fc2_w"], p["fc2_b"] = linear(keys[1], hidden, hidden)
    p["road_adv_w"], p["road_adv_b"] = linear(keys[2], hidden, num_road)
    p["road_val_w"], p["road_val_b"] = linear(keys[3], hidden, 1)
    p["upgrade_adv_w"], p["upgrade_adv_b"] = linear(keys[4], hidden, num_upg)
    p["upgrade_val_w"], p["upgrade_val_b"] = linear(keys[5], hidden, 1)
    return p


def _reference_forward(state, p):
    """Pure-JAX reference of DQNetwork.forward."""
    h = jax.nn.relu(state @ p["fc1_w"] + p["fc1_b"])
    h = jax.nn.relu(h @ p["fc2_w"] + p["fc2_b"])
    ra = h @ p["road_adv_w"] + p["road_adv_b"]
    rv = h @ p["road_val_w"] + p["road_val_b"]
    q_road = rv + (ra - ra.mean(axis=-1, keepdims=True))
    ua = h @ p["upgrade_adv_w"] + p["upgrade_adv_b"]
    uv = h @ p["upgrade_val_w"] + p["upgrade_val_b"]
    q_upg = uv + (ua - ua.mean(axis=-1, keepdims=True))
    return q_road, q_upg


if __name__ == "__main__":
    # Small, module-consistent shapes.
    batch = 2
    state_size = 16
    num_road_segments = 8
    num_upgrade_types = 4
    hidden_size = 32

    key = jax.random.PRNGKey(0)
    k_params, k_state, k_state_big = jax.random.split(key, 3)

    params = init_params(k_params, state_size, num_road_segments,
                         num_upgrade_types, hidden_size)
    state = jax.random.normal(k_state, (batch, state_size), jnp.float32)

    # --- f32 path, tiny batch (single full-extent block, grid of 1) ---
    prep_f32 = prepare_params(params)
    q_road, q_upgrade = dqn_forward(state, prep_f32)
    q_road, q_upgrade = jax.block_until_ready((q_road, q_upgrade))

    ref_road, ref_upg = _reference_forward(state, params)
    assert q_road.shape == (batch, num_road_segments)
    assert q_upgrade.shape == (batch, num_upgrade_types)
    assert jnp.allclose(q_road, ref_road, atol=1e-4, rtol=1e-4)
    assert jnp.allclose(q_upgrade, ref_upg, atol=1e-4, rtol=1e-4)

    # --- bf16 matmul + bf16 I/O path, ragged batch (2 balanced tiles,
    #     masked partial trailing block) ---
    big_batch = 300
    state_big = jax.random.normal(k_state_big, (big_batch, state_size), jnp.float32)
    prep_bf16 = prepare_params(params, matmul_dtype=jnp.bfloat16,
                               out_dtype=jnp.bfloat16)
    qb_road, qb_upg = dqn_forward(state_big.astype(jnp.bfloat16), prep_bf16)
    qb_road, qb_upg = jax.block_until_ready((qb_road, qb_upg))

    refb_road, refb_upg = _reference_forward(state_big, params)
    assert qb_road.shape == (big_batch, num_road_segments)
    assert qb_upg.shape == (big_batch, num_upgrade_types)
    assert jnp.allclose(qb_road.astype(jnp.float32), refb_road, atol=5e-2, rtol=5e-2)
    assert jnp.allclose(qb_upg.astype(jnp.float32), refb_upg, atol=5e-2, rtol=5e-2)

    print("KERNEL_OK")
</pallas_src>

<mosaic_0001>
module attributes {stable_mosaic.version = 11 : i64} {
  func.func @_dqn_kernel(%arg0: i32, %arg1: memref<2x16xf32, #tpu.memory_space<vmem>>, %arg2: memref<16x128xf32, #tpu.memory_space<vmem>>, %arg3: memref<128x128xf32, #tpu.memory_space<vmem>>, %arg4: memref<128x128xf32, #tpu.memory_space<vmem>>, %arg5: memref<3x128xf32, #tpu.memory_space<vmem>>, %arg6: memref<2x128xf32, #tpu.memory_space<vmem>>) attributes {dimension_semantics = [#tpu.dimension_semantics<parallel>], iteration_bounds = array<i64: 1>, scalar_prefetch = 0 : i64, scratch_operands = 0 : i64, tpu.core_type = #tpu.core_type<tc>, window_params = [{transform_indices = @transform_0, window_bounds = array<i64: 2, 16>}, {pipeline_mode = #tpu.pipeline_mode<synchronous>, transform_indices = @transform_1, window_bounds = array<i64: 16, 128>}, {pipeline_mode = #tpu.pipeline_mode<synchronous>, transform_indices = @transform_2, window_bounds = array<i64: 128, 128>}, {pipeline_mode = #tpu.pipeline_mode<synchronous>, transform_indices = @transform_3, window_bounds = array<i64: 128, 128>}, {pipeline_mode = #tpu.pipeline_mode<synchronous>, transform_indices = @transform_4, window_bounds = array<i64: 3, 128>}, {transform_indices = @transform_5, window_bounds = array<i64: 2, 128>}]} {
    %c0 = arith.constant 0 : index
    %c0_0 = arith.constant 0 : index
    %0 = vector.load %arg1[%c0, %c0_0] : memref<2x16xf32, #tpu.memory_space<vmem>>, vector<2x16xf32>
    %c0_1 = arith.constant 0 : index
    %c0_2 = arith.constant 0 : index
    %1 = vector.load %arg2[%c0_1, %c0_2] : memref<16x128xf32, #tpu.memory_space<vmem>>, vector<16x128xf32>
    %cst = arith.constant dense<0.000000e+00> : vector<2x128xf32>
    %2 = tpu.matmul %0, %1, %cst {dimension_numbers = #tpu.dot_dimension_numbers<[1], [0], [0], [1], [0, 0, 1, 1], [], []>} : vector<2x16xf32>, vector<16x128xf32>, vector<2x128xf32> -> vector<2x128xf32>
    %c0_3 = arith.constant 0 : index
    %c0_4 = arith.constant 0 : index
    %3 = vector.load %arg5[%c0_3, %c0_4] : memref<3x128xf32, #tpu.memory_space<vmem>>, vector<1x128xf32>
    %4 = vector.broadcast %3 : vector<1x128xf32> to vector<2x128xf32>
    %5 = arith.addf %2, %4 : vector<2x128xf32>
    %cst_5 = arith.constant 0.000000e+00 : f32
    %6 = vector.broadcast %cst_5 : f32 to vector<2x128xf32>
    %7 = arith.maximumf %5, %6 : vector<2x128xf32>
    %c0_6 = arith.constant 0 : index
    %c0_7 = arith.constant 0 : index
    %8 = vector.load %arg3[%c0_6, %c0_7] : memref<128x128xf32, #tpu.memory_space<vmem>>, vector<128x128xf32>
    %cst_8 = arith.constant dense<0.000000e+00> : vector<2x128xf32>
    %9 = tpu.matmul %7, %8, %cst_8 {dimension_numbers = #tpu.dot_dimension_numbers<[1], [0], [0], [1], [0, 0, 1, 1], [], []>} : vector<2x128xf32>, vector<128x128xf32>, vector<2x128xf32> -> vector<2x128xf32>
    %c1 = arith.constant 1 : index
    %c0_9 = arith.constant 0 : index
    %10 = vector.load %arg5[%c1, %c0_9] : memref<3x128xf32, #tpu.memory_space<vmem>>, vector<1x128xf32>
    %11 = vector.broadcast %10 : vector<1x128xf32> to vector<2x128xf32>
    %12 = arith.addf %9, %11 : vector<2x128xf32>
    %cst_10 = arith.constant 0.000000e+00 : f32
    %13 = vector.broadcast %cst_10 : f32 to vector<2x128xf32>
    %14 = arith.maximumf %12, %13 : vector<2x128xf32>
    %c0_11 = arith.constant 0 : index
    %c0_12 = arith.constant 0 : index
    %15 = vector.load %arg4[%c0_11, %c0_12] : memref<128x128xf32, #tpu.memory_space<vmem>>, vector<128x128xf32>
    %cst_13 = arith.constant dense<0.000000e+00> : vector<2x128xf32>
    %16 = tpu.matmul %14, %15, %cst_13 {dimension_numbers = #tpu.dot_dimension_numbers<[1], [0], [0], [1], [0, 0, 1, 1], [], []>} : vector<2x128xf32>, vector<128x128xf32>, vector<2x128xf32> -> vector<2x128xf32>
    %c2 = arith.constant 2 : index
    %c0_14 = arith.constant 0 : index
    %17 = vector.load %arg5[%c2, %c0_14] : memref<3x128xf32, #tpu.memory_space<vmem>>, vector<1x128xf32>
    %18 = vector.broadcast %17 : vector<1x128xf32> to vector<2x128xf32>
    %19 = arith.addf %16, %18 : vector<2x128xf32>
    %c0_15 = arith.constant 0 : index
    %c0_16 = arith.constant 0 : index
    %20 = vector.load %arg6[%c0_15, %c0_16] : memref<2x128xf32, #tpu.memory_space<vmem>>, vector<2x128xf32>
    tpu.vector_store %arg6[%c0_15, %c0_16], %19 {strides = array<i32>} : memref<2x128xf32, #tpu.memory_space<vmem>>, vector<2x128xf32>,
    return
  }
  func.func @transform_0(%arg0: i32) -> (i32, i32) {
    %c0_i32 = arith.constant 0 : i32
    %c0_i32_0 = arith.constant 0 : i32
    return %arg0, %c0_i32 : i32, i32
  }
  func.func @transform_1(%arg0: i32) -> (i32, i32) {
    %c0_i32 = arith.constant 0 : i32
    %c0_i32_0 = arith.constant 0 : i32
    %c0_i32_1 = arith.constant 0 : i32
    return %c0_i32, %c0_i32_0 : i32, i32
  }
  func.func @transform_2(%arg0: i32) -> (i32, i32) {
    %c0_i32 = arith.constant 0 : i32
    %c0_i32_0 = arith.constant 0 : i32
    %c0_i32_1 = arith.constant 0 : i32
    return %c0_i32, %c0_i32_0 : i32, i32
  }
  func.func @transform_3(%arg0: i32) -> (i32, i32) {
    %c0_i32 = arith.constant 0 : i32
    %c0_i32_0 = arith.constant 0 : i32
    %c0_i32_1 = arith.constant 0 : i32
    return %c0_i32, %c0_i32_0 : i32, i32
  }
  func.func @transform_4(%arg0: i32) -> (i32, i32) {
    %c0_i32 = arith.constant 0 : i32
    %c0_i32_0 = arith.constant 0 : i32
    %c0_i32_1 = arith.constant 0 : i32
    return %c0_i32, %c0_i32_0 : i32, i32
  }
  func.func @transform_5(%arg0: i32) -> (i32, i32) {
    %c0_i32 = arith.constant 0 : i32
    %c0_i32_0 = arith.constant 0 : i32
    return %arg0, %c0_i32 : i32, i32
  }
}

</mosaic_0001>

<bundles_post_ra>
// kernel: tpu_custom_call.1
= control target key start
LH: loop header
LB: loop body
LE: loop exit
PB: predicated region body
PF: predicated region fallthrough
CT: control target
= control target key end

     0   :  { %10 = vsyncpa [#allocation3], 0  ;;  %s793_s0 = inlined_call_operand.hbm [shape: f32[2,16], index: 0, kind: input, shape index: {}]   ;;  %s794_s1 = inlined_call_operand.hbm [shape: f32[16,128], index: 1, kind: input, shape index: {}]   ;;  %s795_s2 = inlined_call_operand.hbm [shape: f32[128,128], index: 2, kind: input, shape index: {}]   ;;  %s796_s3 = inlined_call_operand.hbm [shape: f32[128,128], index: 3, kind: input, shape index: {}]   ;;  %s797_s4 = inlined_call_operand.vmem [shape: f32[3,128], index: 4, kind: input, shape index: {}]   ;;  %s798_s5 = inlined_call_operand.hbm [shape: f32[2,128], index: 5, kind: output, shape index: {}]  }
   0x1   :  { %11 = vsyncpa [#allocation6], 0 }
   0x2   :  { %12 = vsyncpa [#allocation9], 0 }
   0x3   :  { %13 = vsyncpa [#allocation4], 0  ;;  %s655_s18 = smov [#allocation5]   ;;  %s537_s22 = scalar_lea.hbm %s794_s1, 256 }
   0x4   :  { %s29_s19 = sshll.u32 %s655_s18, 4  ;;  %p538_p0 = scmp.ne.s32.totalorder %s794_s1, %s537_s22  ;;  %s30_s19 = int_to_ptr.vmem [resolvable:$true] %s29_s19 }
   0x5   :  { %p541_p1 = scmp.lt.u32.totalorder %s537_s22, %s794_s1 }
   0x7   :  { %p543_p2 = pnand %p541_p1, %p538_p0 }
   0x9   :  { %546 = shalt.err (!%p543_p2)
}
   0xa   :  { %s547_s27 = scalar_lea.vmem %s30_s19, 256  ;;  %p552_p4 = scmp.lt.s32.totalorder %s30_s19, %s30_s19 }
   0xb   :  { %p548_p3 = scmp.ne.s32.totalorder %s30_s19, %s547_s27  ;;  %p553_p5 = scmp.lt.s32.totalorder %s547_s27, %s547_s27 }
   0xd   :  { %p554_p6 = por %p553_p5, %p552_p4 }
   0xf   :  { %p555_p7 = pnand %p554_p6, %p548_p3 }
  0x11   :  { %558 = shalt.err (!%p555_p7)
}
  0x12   :  { %s656_s28 = smov 128   ;;  %s657_s29 = smov 8  }
  0x13   :  { %35 = dma.hbm_to_vmem [thread:$0]  %s794_s1, 256, %s30_s19, [#allocation6], %s656_s28, %s656_s28, %s657_s29  }
  0x14   :  { %s658_s7 = smov [#allocation2]   ;;  %s659_s9 = smov [#allocation7]  }
  0x15   :  { %s20_s8 = sshll.u32 %s658_s7, 4  ;;  %s41_s10 = sshll.u32 %s659_s9, 4  ;;  %s21_s8 = int_to_ptr.vmem [resolvable:$true] %s20_s8  ;;  %s42_s10 = int_to_ptr.vmem [resolvable:$true] %s41_s10 }
  0x16   :  { %s559_s13 = scalar_lea.hbm %s793_s0, 32 }
  0x17   :  { %p560_p8 = scmp.ne.s32.totalorder %s793_s0, %s559_s13  ;;  %p563_p9 = scmp.lt.u32.totalorder %s559_s13, %s793_s0 }
  0x19   :  { %p565_p10 = pnand %p563_p9, %p560_p8 }
  0x1b   :  { %568 = shalt.err (!%p565_p10)
}
  0x1c   :  { %s569_s1 = scalar_lea.vmem %s21_s8, 32  ;;  %p574_p12 = scmp.lt.s32.totalorder %s21_s8, %s21_s8 }
  0x1d   :  { %p570_p11 = scmp.ne.s32.totalorder %s21_s8, %s569_s1  ;;  %p575_p13 = scmp.lt.s32.totalorder %s569_s1, %s569_s1 }
  0x1f   :  { %p576_p0 = por %p575_p13, %p574_p12 }
  0x21   :  { %p577_p1 = pnand %p576_p0, %p570_p11 }
  0x23   :  { %580 = shalt.err (!%p577_p1)
}
  0x24   :  { %23 = dma.hbm_to_vmem [thread:$0]  %s793_s0, 32, %s21_s8, [#allocation3]  }
  0x25   :  { %s581_s22 = scalar_lea.hbm %s795_s2, 2048 }
  0x26   :  { %p582_p2 = scmp.ne.s32.totalorder %s795_s2, %s581_s22  ;;  %p585_p3 = scmp.lt.u32.totalorder %s581_s22, %s795_s2 }
  0x28   :  { %p587_p4 = pnand %p585_p3, %p582_p2 }
  0x2a   :  { %590 = shalt.err (!%p587_p4)
}
  0x2b   :  { %s591_s27 = scalar_lea.vmem %s42_s10, 2048  ;;  %p596_p6 = scmp.lt.s32.totalorder %s42_s10, %s42_s10 }
  0x2c   :  { %p592_p5 = scmp.ne.s32.totalorder %s42_s10, %s591_s27  ;;  %p597_p7 = scmp.lt.s32.totalorder %s591_s27, %s591_s27 }
  0x2e   :  { %p598_p8 = por %p597_p7, %p596_p6 }
  0x30   :  { %p599_p9 = pnand %p598_p8, %p592_p5 }
  0x32   :  { %602 = shalt.err (!%p599_p9)
}
  0x33   :  { %47 = dma.hbm_to_vmem [thread:$0]  %s795_s2, 2048, %s42_s10, [#allocation6], %s656_s28, %s656_s28, %s657_s29  }
  0x34   :  { %s660_s6 = smov [#allocation8]   ;;  %s603_s11 = scalar_lea.hbm %s796_s3, 2048 }
  0x35   :  { %s53_s7 = sshll.u32 %s660_s6, 4  ;;  %p604_p10 = scmp.ne.s32.totalorder %s796_s3, %s603_s11  ;;  %s54_s7 = int_to_ptr.vmem [resolvable:$true] %s53_s7 }
  0x36   :  { %p607_p11 = scmp.lt.u32.totalorder %s603_s11, %s796_s3 }
  0x38   :  { %p609_p12 = pnand %p607_p11, %p604_p10 }
  0x3a   :  { %612 = shalt.err (!%p609_p12)
}
  0x3b   :  { %s613_s16 = scalar_lea.vmem %s54_s7, 2048  ;;  %p618_p0 = scmp.lt.s32.totalorder %s54_s7, %s54_s7 }
  0x3c   :  { %p614_p13 = scmp.ne.s32.totalorder %s54_s7, %s613_s16  ;;  %p619_p1 = scmp.lt.s32.totalorder %s613_s16, %s613_s16 }
  0x3e   :  { %p620_p2 = por %p619_p1, %p618_p0 }
  0x40   :  { %p621_p3 = pnand %p620_p2, %p614_p13 }
  0x42   :  { %624 = shalt.err (!%p621_p3)
}
  0x43   :  { %59 = dma.hbm_to_vmem [thread:$0]  %s796_s3, 2048, %s54_s7, [#allocation9], %s656_s28, %s656_s28, %s657_s29  }
  0x44   :  { %647 = dma.done.wait [#allocation3], 32  }
  0x45   :  { %648 = vsyncadd [#allocation3], 4294967264 }
  0x46   :  { %649 = dma.done.wait [#allocation6], 2304  }
  0x47   :  { %650 = vsyncadd [#allocation6], 4294964992 }
  0x48   :  { %651 = dma.done.wait [#allocation9], 2048  }
  0x49   :  { %652 = vsyncadd [#allocation9], 4294965248  ;;  %v661_v0 = vmov 0.0|0.0   ;;  %vm662_vm0 = vmmov 0   ;;  %v663_v1 = vmov 0.0   ;;  %v75_v2 = vld [vmem:[#allocation5] sm:$0xff] }
  0x4a   :  { %476 = vmatprep.subr.bf16.mxu0 %v661_v0  ;;  %403 = vmatprep.mubr.msk.f32.mxu0 %vm662_vm0, %v663_v1  ;;  %v76_v3 = vld [vmem:[#allocation5 + $0x8] sm:$0xff]  ;;  %v157_v5 = vld [vmem:[#allocation7] sm:$0xff]  ;;  %v158_v6 = vld [vmem:[#allocation7 + $0x8] sm:$0xff]  ;;  %vm82_vm1 = vcmask 130048   ;;  %s664_s19 = smov [#allocation10]  }
  0x4b   :  { %479 = vmatprep.subr.bf16.mxu1 %v661_v0  ;;  %438 = vmatprep.mubr.msk.f32.mxu1 %vm662_vm0, %v663_v1  ;;  %v477_v4 = vpack.c.bf16 %v76_v3, %v75_v2  ;;  %v159_v7 = vld [vmem:[#allocation7 + $0x10] sm:$0xff]  ;;  %v480_v8 = vpack.c.bf16 %v158_v6, %v157_v5  ;;  %v160_v9 = vld [vmem:[#allocation7 + $0x18] sm:$0xff]  ;;  %v74_v10 = vld [vmem:[#allocation2] sm:$0x3]  ;;  %s347_s20 = sshll.u32 %s664_s19, 4  ;;  %s348_s20 = int_to_ptr.vmem [resolvable:$true] %s347_s20 }
  0x4c   :  { %v483_v11 = vpack.c.bf16 %v160_v9, %v159_v7  ;;  %v161_v12 = vld [vmem:[#allocation7 + $0x20] sm:$0xff]  ;;  %v162_v13 = vld [vmem:[#allocation7 + $0x28] sm:$0xff]  ;;  %v163_v15 = vld [vmem:[#allocation7 + $0x30] sm:$0xff]  ;;  %s625_s21 = scalar_lea.vmem %s348_s20, 32  ;;  %p630_p5 = scmp.lt.s32.totalorder %s348_s20, %s348_s20 }
  0x4d   :  { %478 = vmatpush3.bf16.msra.mxu0 %v477_v4  ;;  %481 = vmatpush3.bf16.msra.mxu1 %v480_v8  ;;  %v486_v14 = vpack.c.bf16 %v162_v13, %v161_v12  ;;  %v164_v16 = vld [vmem:[#allocation7 + $0x38] sm:$0xff]  ;;  %v165_v18 = vld [vmem:[#allocation7 + $0x40] sm:$0xff]  ;;  %v166_v19 = vld [vmem:[#allocation7 + $0x48] sm:$0xff]  ;;  %p626_p4 = scmp.ne.s32.totalorder %s348_s20, %s625_s21  ;;  %p631_p6 = scmp.lt.s32.totalorder %s625_s21, %s625_s21 }
  0x4e   :  { %503 = vmatprep.subr.bf16.mxu0 %v661_v0  ;;  %482 = vmatprep.subr.bf16.mxu1 %v661_v0  ;;  %v489_v17 = vpack.c.bf16 %v164_v16, %v163_v15  ;;  %v492_v20 = vpack.c.bf16 %v166_v19, %v165_v18  ;;  %v167_v21 = vld [vmem:[#allocation7 + $0x50] sm:$0xff]  ;;  %v168_v22 = vld [vmem:[#allocation7 + $0x58] sm:$0xff]  ;;  %v169_v24 = vld [vmem:[#allocation7 + $0x60] sm:$0xff] }
  0x4f   :  { %v495_v23 = vpack.c.bf16 %v168_v22, %v167_v21  ;;  %v170_v25 = vld [vmem:[#allocation7 + $0x68] sm:$0xff]  ;;  %v171_v27 = vld [vmem:[#allocation7 + $0x70] sm:$0xff]  ;;  %v172_v28 = vld [vmem:[#allocation7 + $0x78] sm:$0xff]  ;;  %p632_p7 = por %p631_p6, %p630_p5 }
  0x50   :  { %404 = vmatmul.mubr.msk.f32.vlgmr.msra.gmra.mrb[0].mxu0 %vm82_vm1, %v74_v10  ;;  %v498_v26 = vpack.c.bf16 %v170_v25, %v169_v24  ;;  %v501_v29 = vpack.c.bf16 %v172_v28, %v171_v27  ;;  %v249_v30 = vld [vmem:[#allocation8] sm:$0xff]  ;;  %v250_v31 = vld [vmem:[#allocation8 + $0x8] sm:$0xff]  ;;  %v251_v32 = vld [vmem:[#allocation8 + $0x10] sm:$0xff] }
  0x51   :  { %473 = vmatprep.mubr.msk.f32.mxu0 %vm662_vm0, %v663_v1  ;;  %484 = vmatpush3.bf16.msra.mxu1 %v483_v11  ;;  %v504_v33 = vpack.c.bf16 %v250_v31, %v249_v30  ;;  %v252_v34 = vld [vmem:[#allocation8 + $0x18] sm:$0xff]  ;;  %v253_v36 = vld [vmem:[#allocation8 + $0x20] sm:$0xff]  ;;  %v254_v37 = vld [vmem:[#allocation8 + $0x28] sm:$0xff]  ;;  %p633_p8 = pnand %p632_p7, %p626_p4 }
  0x52   :  { %485 = vmatprep.subr.bf16.mxu1 %v661_v0  ;;  %v507_v35 = vpack.c.bf16 %v252_v34, %v251_v32  ;;  %v510_v38 = vpack.c.bf16 %v254_v37, %v253_v36  ;;  %v255_v39 = vld [vmem:[#allocation8 + $0x30] sm:$0xff]  ;;  %v256_v40 = vld [vmem:[#allocation8 + $0x38] sm:$0xff]  ;;  %v257_v42 = vld [vmem:[#allocation8 + $0x40] sm:$0xff] }
  0x53   :  { %505 = vmatpush3.bf16.msra.mxu0 %v504_v33  ;;  %v513_v41 = vpack.c.bf16 %v256_v40, %v255_v39  ;;  %v258_v43 = vld [vmem:[#allocation8 + $0x48] sm:$0xff]  ;;  %v259_v45 = vld [vmem:[#allocation8 + $0x50] sm:$0xff]  ;;  %v260_v46 = vld [vmem:[#allocation8 + $0x58] sm:$0xff] }
  0x54   :  { %506 = vmatprep.subr.bf16.mxu0 %v661_v0  ;;  %v516_v44 = vpack.c.bf16 %v258_v43, %v257_v42  ;;  %v519_v47 = vpack.c.bf16 %v260_v46, %v259_v45  ;;  %v261_v48 = vld [vmem:[#allocation8 + $0x60] sm:$0xff]  ;;  %v262_v49 = vld [vmem:[#allocation8 + $0x68] sm:$0xff]  ;;  %v263_v56 = vld [vmem:[#allocation8 + $0x70] sm:$0xff] }
  0x55   :  { %487 = vmatpush3.bf16.msra.mxu1 %v486_v14  ;;  %v522_v50 = vpack.c.bf16 %v262_v49, %v261_v48  ;;  %v358_v51 = vld [vmem:[%s797_s4] ss:$0 sm:$0xff]  ;;  %v264_v57 = vld [vmem:[#allocation8 + $0x78] sm:$0xff]  ;;  %v360_v59 = vld [vmem:[%s797_s4 + $0x1] ss:$0 sm:$0xff] }
  0x56   :  { %488 = vmatprep.subr.bf16.mxu1 %v661_v0  ;;  %v525_v58 = vpack.c.bf16 %v264_v57, %v263_v56 }
  0x57   :  { %508 = vmatpush3.bf16.msra.mxu0 %v507_v35 }
  0x58   :  { %509 = vmatprep.subr.bf16.mxu0 %v661_v0 }
  0x59   :  { %490 = vmatpush3.bf16.msra.mxu1 %v489_v17 }
  0x5a   :  { %491 = vmatprep.subr.bf16.mxu1 %v661_v0 }
  0x5b   :  { %511 = vmatpush3.bf16.msra.mxu0 %v510_v38 }
  0x5c   :  { %512 = vmatprep.subr.bf16.mxu0 %v661_v0 }
  0x5d   :  { %493 = vmatpush3.bf16.msra.mxu1 %v492_v20 }
  0x5e   :  { %494 = vmatprep.subr.bf16.mxu1 %v661_v0 }
  0x5f   :  { %514 = vmatpush3.bf16.msra.mxu0 %v513_v41 }
  0x60   :  { %515 = vmatprep.subr.bf16.mxu0 %v661_v0 }
  0x61   :  { %496 = vmatpush3.bf16.msra.mxu1 %v495_v23 }
  0x62   :  { %497 = vmatprep.subr.bf16.mxu1 %v661_v0 }
  0x63   :  { %517 = vmatpush3.bf16.msra.mxu0 %v516_v44 }
  0x64   :  { %518 = vmatprep.subr.bf16.mxu0 %v661_v0 }
  0x65   :  { %499 = vmatpush3.bf16.msra.mxu1 %v498_v26 }
  0x66   :  { %500 = vmatprep.subr.bf16.mxu1 %v661_v0 }
  0x67   :  { %520 = vmatpush3.bf16.msra.mxu0 %v519_v47 }
  0x68   :  { %521 = vmatprep.subr.bf16.mxu0 %v661_v0 }
  0x69   :  { %502 = vmatpush3.bf16.msra.mxu1 %v501_v29 }
  0x6b   :  { %523 = vmatpush3.bf16.msra.mxu0 %v522_v50 }
  0x6c   :  { %524 = vmatprep.subr.bf16.mxu0 %v661_v0  ;;  %v361_v0 = vld [vmem:[%s797_s4 + $0x2] ss:$0 sm:$0xff] }
  0x6f   :  { %526 = vmatpush3.bf16.msra.mxu0 %v525_v58 }
 0x123   :  { %v152_v52 = vpop.f32.mrb[0].mxu0 }
 0x124   :  { %v153_v53 = vadd.f32 %v358_v51, %v152_v52  ;;  %v405_v54 = vpop.f32.mrb[1].mxu0 }
 0x126   :  { %v156_v55 = vmax.f32 %v153_v53, 0.0 }
 0x128   :  { %439 = vmatmul.mubr.f32.vlgmr.msra.gmra.mrb[0].mxu1 %v156_v55 }
 0x1fb   :  { %v244_v60 = vpop.f32.mrb[0].mxu1 }
 0x1fc   :  { %v245_v61 = vadd.f32 %v360_v59, %v244_v60  ;;  %v440_v62 = vpop.f32.mrb[1].mxu1 }
 0x1fe   :  { %v248_v63 = vmax.f32 %v245_v61, 0.0 }
 0x200   :  { %474 = vmatmul.mubr.f32.vlgmr.msra.gmra.mrb[2].mxu0 %v248_v63 }
 0x2d3   :  { %v336_v1 = vpop.f32.mrb[2].mxu0 }
 0x2d4   :  { %v337_v2 = vadd.f32 %v361_v0, %v336_v1  ;;  %v475_v3 = vpop.f32.mrb[3].mxu0 }
 0x2d6   :  { %340 = vst [vmem:[#allocation10] sm:$0x3] %v337_v2 }
 0x2d7   :  { %636 = shalt.err (!%p633_p8)
}
 0x2d8   :  { %s637_s24 = scalar_lea.hbm %s798_s5, 32 }
 0x2d9   :  { %p638_p9 = scmp.ne.s32.totalorder %s798_s5, %s637_s24  ;;  %p641_p10 = scmp.lt.u32.totalorder %s637_s24, %s798_s5 }
 0x2db   :  { %p643_p11 = pnand %p641_p10, %p638_p9 }
 0x2dd   :  { %646 = shalt.err (!%p643_p11)
}
 0x2de   :  { %350 = dma.vmem_to_hbm [thread:$0]  %s348_s20, 32, %s798_s5, [#allocation4]  }
 0x2df   :  { %653 = dma.done.wait [#allocation4], 32  }
 0x2e0   :  { %654 = vsyncadd [#allocation4], 4294967264 }
 0x2e1   :  { %354 = vsyncpa [#allocation3], 1 }
 0x2e2   :  { %355 = vsyncpa [#allocation6], 1 }
 0x2e3   :  { %356 = vsyncpa [#allocation9], 1 }
 0x2e4   :  { %357 = vsyncpa [#allocation4], 1 }

</bundles_post_ra>
